<compile_context>
chip_gen: v7x
topology: tpu7x:2x2x1
jax: 0.10.0
libtpu: 0.0.40
codegen_flags: <defaults>
</compile_context>

<pallas_src>
import functools

import jax
import jax.numpy as jnp
from jax.experimental import pallas as pl
from jax.experimental.pallas import tpu as pltpu

P_DROP = 0.2
KEEP_PROB = 1.0 - P_DROP
# drop an element iff uniform_u32 < P_DROP * 2^32
DROP_THRESH_U32 = int(round(P_DROP * (2 ** 32)))

_SALT_L1 = 0x243F6A88  # per-layer salts so the two dropout masks are independent
_SALT_L2 = 0x85A308D3


def _mix_u32(x):
    """splitmix32-style finalizer; pure VPU integer ops (works on TPU + interpret)."""
    x = x ^ (x >> 16)
    x = x * jnp.uint32(0x7FEB352D)
    x = x ^ (x >> 15)
    x = x * jnp.uint32(0x846CA68B)
    x = x ^ (x >> 16)
    return x


def _dropout_keep_mask(seed_u32, salt, shape, col_offset_u32):
    """Boolean keep-mask for a [features, tile_batch] activation block."""
    rows = jax.lax.broadcasted_iota(jnp.uint32, shape, 0)            # feature idx
    cols = jax.lax.broadcasted_iota(jnp.uint32, shape, 1)            # in-tile batch
    cols = cols + col_offset_u32                                     # global batch idx
    ctr = (cols * jnp.uint32(0x9E3779B9)) ^ (rows * jnp.uint32(0xC2B2AE35))
    bits = _mix_u32(ctr ^ seed_u32 ^ jnp.uint32(salt))
    return bits >= jnp.uint32(DROP_THRESH_U32)


def mlp_dropout_kernel(seed_ref, xT_ref, w1_ref, b1_ref, w2_ref, b2_ref,
                       w3_ref, b3_ref, o_ref, *, tb):
    seed_u32 = seed_ref[0].astype(jnp.uint32)
    # distinct dropout bits per batch tile (global column offset folded in)
    col_off = (pl.program_id(0) * tb).astype(jnp.uint32)
    inv_keep = jnp.float32(1.0 / KEEP_PROB)

    xT = xT_ref[...]                                                  # [10, tb]

    # ---- Linear(10, 30) + dropout(0.2) ----
    h1 = jnp.dot(w1_ref[...], xT, preferred_element_type=jnp.float32) + b1_ref[...]
    keep1 = _dropout_keep_mask(seed_u32, _SALT_L1, h1.shape, col_off)
    h1 = jnp.where(keep1, h1 * inv_keep, jnp.float32(0.0))            # [30, tb]

    # ---- Linear(30, 60) + dropout(0.2) ----
    h2 = jnp.dot(w2_ref[...], h1, preferred_element_type=jnp.float32) + b2_ref[...]
    keep2 = _dropout_keep_mask(seed_u32, _SALT_L2, h2.shape, col_off)
    h2 = jnp.where(keep2, h2 * inv_keep, jnp.float32(0.0))            # [60, tb]

    # ---- Linear(60, 1) ----
    h3 = jnp.dot(w3_ref[...], h2, preferred_element_type=jnp.float32) + b3_ref[...]
    o_ref[...] = h3.astype(o_ref.dtype)                               # [1, tb] lane-dense


def estimate_loss_net_forward(x, params, seed, *, tb_max=2048):
    """x: [B, 10] float32 -> [B, 1] float32 (train-mode dropout active)."""
    w1, b1, w2, b2, w3, b3 = params
    B = x.shape[0]
    # block last dim must equal the full array dim or be a multiple of 128
    tb = B if B <= tb_max else tb_max
    num_tiles = pl.cdiv(B, tb)

    xT = x.T                                        # [10, B], batch on the lane axis
    seed_arr = jnp.asarray([seed], dtype=jnp.int32)

    flops = 2 * B * (10 * 30 + 30 * 60 + 60 * 1)
    bytes_accessed = 4 * (B * 10 + B * 1 + 30 * 10 + 30 + 60 * 30 + 60 + 60 + 1)

    kernel = functools.partial(mlp_dropout_kernel, tb=tb)

    grid_spec = pltpu.PrefetchScalarGridSpec(
        num_scalar_prefetch=1,                      # seed lands in SMEM
        grid=(num_tiles,),
        in_specs=[
            pl.BlockSpec((10, tb), lambda i, seed: (0, i)),   # x tile (marches over batch)
            pl.BlockSpec((30, 10), lambda i, seed: (0, 0)),   # W1 [out, in], resident
            pl.BlockSpec((30, 1), lambda i, seed: (0, 0)),    # b1
            pl.BlockSpec((60, 30), lambda i, seed: (0, 0)),   # W2
            pl.BlockSpec((60, 1), lambda i, seed: (0, 0)),    # b2
            pl.BlockSpec((1, 60), lambda i, seed: (0, 0)),    # W3
            pl.BlockSpec((1, 1), lambda i, seed: (0, 0)),     # b3
        ],
        out_specs=pl.BlockSpec((1, tb), lambda i, seed: (0, i)),
    )

    out_T = pl.pallas_call(
        kernel,
        out_shape=jax.ShapeDtypeStruct((1, B), jnp.float32),
        grid_spec=grid_spec,
        compiler_params=pltpu.CompilerParams(
            dimension_semantics=("parallel",),      # megacore sharding on v7x
        ),
        cost_estimate=pl.CostEstimate(
            flops=flops, transcendentals=0, bytes_accessed=bytes_accessed),
    )(seed_arr, xT, w1, b1, w2, b2, w3, b3)

    return out_T.reshape(B, 1)


def init_params(key):
    """Deterministic init matching nn.Linear (uniform +-1/sqrt(fan_in)).

    Weights are stored in PyTorch layout [out_features, in_features]; biases as
    [out_features, 1] column vectors for the feature-major kernel.
    """
    def linear(key, fan_in, fan_out):
        kw, kb = jax.random.split(key)
        bound = 1.0 / (fan_in ** 0.5)
        w = jax.random.uniform(kw, (fan_out, fan_in), jnp.float32, -bound, bound)
        b = jax.random.uniform(kb, (fan_out, 1), jnp.float32, -bound, bound)
        return w, b

    k1, k2, k3 = jax.random.split(key, 3)
    w1, b1 = linear(k1, 10, 30)
    w2, b2 = linear(k2, 30, 60)
    w3, b3 = linear(k3, 60, 1)
    return (w1, b1, w2, b2, w3, b3)


if __name__ == "__main__":
    key = jax.random.PRNGKey(0)
    k_params, k_input = jax.random.split(key)

    params = init_params(k_params)

    batch = 8
    x = jax.random.normal(k_input, (batch, 10), dtype=jnp.float32)

    out = estimate_loss_net_forward(x, params, seed=0)
    out = jax.block_until_ready(out)

    assert out.shape == (batch, 1), out.shape
    assert out.dtype == jnp.float32, out.dtype
    assert bool(jnp.all(jnp.isfinite(out)))

    print("KERNEL_OK")
</pallas_src>

<mosaic_0001>
module attributes {stable_mosaic.version = 11 : i64} {
  func.func @mlp_dropout_kernel(%arg0: i32, %arg1: memref<1xi32, #tpu.memory_space<smem>>, %arg2: memref<10x8xf32, #tpu.memory_space<vmem>>, %arg3: memref<30x10xf32, #tpu.memory_space<vmem>>, %arg4: memref<30x1xf32, #tpu.memory_space<vmem>>, %arg5: memref<60x30xf32, #tpu.memory_space<vmem>>, %arg6: memref<60x1xf32, #tpu.memory_space<vmem>>, %arg7: memref<1x60xf32, #tpu.memory_space<vmem>>, %arg8: memref<1x1xf32, #tpu.memory_space<vmem>>, %arg9: memref<1x8xf32, #tpu.memory_space<vmem>>) attributes {dimension_semantics = [#tpu.dimension_semantics<parallel>], iteration_bounds = array<i64: 1>, scalar_prefetch = 1 : i64, scratch_operands = 0 : i64, tpu.core_type = #tpu.core_type<tc>, window_params = [{transform_indices = @transform_0, window_bounds = array<i64: 10, 8>}, {pipeline_mode = #tpu.pipeline_mode<synchronous>, transform_indices = @transform_1, window_bounds = array<i64: 30, 10>}, {pipeline_mode = #tpu.pipeline_mode<synchronous>, transform_indices = @transform_2, window_bounds = array<i64: 30, 1>}, {pipeline_mode = #tpu.pipeline_mode<synchronous>, transform_indices = @transform_3, window_bounds = array<i64: 60, 30>}, {pipeline_mode = #tpu.pipeline_mode<synchronous>, transform_indices = @transform_4, window_bounds = array<i64: 60, 1>}, {pipeline_mode = #tpu.pipeline_mode<synchronous>, transform_indices = @transform_5, window_bounds = array<i64: 1, 60>}, {pipeline_mode = #tpu.pipeline_mode<synchronous>, transform_indices = @transform_6, window_bounds = array<i64: 1, 1>}, {transform_indices = @transform_7, window_bounds = array<i64: 1, 8>}]} {
    %c0 = arith.constant 0 : index
    %0 = memref.load %arg1[%c0] : memref<1xi32, #tpu.memory_space<smem>>
    %c8_i32 = arith.constant 8 : i32
    %1 = arith.muli %arg0, %c8_i32 : i32
    %c0_0 = arith.constant 0 : index
    %c0_1 = arith.constant 0 : index
    %2 = vector.load %arg2[%c0_0, %c0_1] : memref<10x8xf32, #tpu.memory_space<vmem>>, vector<10x8xf32>
    %c0_2 = arith.constant 0 : index
    %c0_3 = arith.constant 0 : index
    %3 = vector.load %arg3[%c0_2, %c0_3] : memref<30x10xf32, #tpu.memory_space<vmem>>, vector<30x10xf32>
    %cst = arith.constant dense<0.000000e+00> : vector<30x8xf32>
    %4 = tpu.matmul %3, %2, %cst {dimension_numbers = #tpu.dot_dimension_numbers<[1], [0], [0], [1], [0, 0, 1, 1], [], []>} : vector<30x10xf32>, vector<10x8xf32>, vector<30x8xf32> -> vector<30x8xf32>
    %c0_4 = arith.constant 0 : index
    %c0_5 = arith.constant 0 : index
    %5 = vector.load %arg4[%c0_4, %c0_5] : memref<30x1xf32, #tpu.memory_space<vmem>>, vector<30x1xf32>
    %6 = vector.broadcast %5 : vector<30x1xf32> to vector<30x8xf32>
    %7 = arith.addf %4, %6 : vector<30x8xf32>
    %8 = tpu.iota {dimensions = array<i32: 0>} : vector<30x8xi32>
    %9 = tpu.iota {dimensions = array<i32: 1>} : vector<30x8xi32>
    %10 = vector.broadcast %1 : i32 to vector<30x8xi32>
    %11 = arith.addi %9, %10 : vector<30x8xi32>
    %c-1640531527_i32 = arith.constant -1640531527 : i32
    %12 = vector.broadcast %c-1640531527_i32 : i32 to vector<30x8xi32>
    %13 = arith.muli %11, %12 : vector<30x8xi32>
    %c-1028477387_i32 = arith.constant -1028477387 : i32
    %14 = vector.broadcast %c-1028477387_i32 : i32 to vector<30x8xi32>
    %15 = arith.muli %8, %14 : vector<30x8xi32>
    %16 = arith.xori %13, %15 : vector<30x8xi32>
    %17 = vector.broadcast %0 : i32 to vector<30x8xi32>
    %18 = arith.xori %16, %17 : vector<30x8xi32>
    %c608135816_i32 = arith.constant 608135816 : i32
    %19 = vector.broadcast %c608135816_i32 : i32 to vector<30x8xi32>
    %20 = arith.xori %18, %19 : vector<30x8xi32>
    %c16_i32 = arith.constant 16 : i32
    %21 = vector.broadcast %c16_i32 : i32 to vector<30x8xi32>
    %22 = arith.shrui %20, %21 : vector<30x8xi32>
    %23 = arith.xori %20, %22 : vector<30x8xi32>
    %c2146121005_i32 = arith.constant 2146121005 : i32
    %24 = vector.broadcast %c2146121005_i32 : i32 to vector<30x8xi32>
    %25 = arith.muli %23, %24 : vector<30x8xi32>
    %c15_i32 = arith.constant 15 : i32
    %26 = vector.broadcast %c15_i32 : i32 to vector<30x8xi32>
    %27 = arith.shrui %25, %26 : vector<30x8xi32>
    %28 = arith.xori %25, %27 : vector<30x8xi32>
    %c-2073254261_i32 = arith.constant -2073254261 : i32
    %29 = vector.broadcast %c-2073254261_i32 : i32 to vector<30x8xi32>
    %30 = arith.muli %28, %29 : vector<30x8xi32>
    %c16_i32_6 = arith.constant 16 : i32
    %31 = vector.broadcast %c16_i32_6 : i32 to vector<30x8xi32>
    %32 = arith.shrui %30, %31 : vector<30x8xi32>
    %33 = arith.xori %30, %32 : vector<30x8xi32>
    %c858993459_i32 = arith.constant 858993459 : i32
    %34 = vector.broadcast %c858993459_i32 : i32 to vector<30x8xi32>
    %35 = arith.cmpi uge, %33, %34 : vector<30x8xi32>
    %cst_7 = arith.constant 1.250000e+00 : f32
    %36 = vector.broadcast %cst_7 : f32 to vector<30x8xf32>
    %37 = arith.mulf %7, %36 : vector<30x8xf32>
    %cst_8 = arith.constant 0.000000e+00 : f32
    %38 = vector.broadcast %cst_8 : f32 to vector<30x8xf32>
    %39 = arith.select %35, %37, %38 : vector<30x8xi1>, vector<30x8xf32>
    %c0_9 = arith.constant 0 : index
    %c0_10 = arith.constant 0 : index
    %40 = vector.load %arg5[%c0_9, %c0_10] : memref<60x30xf32, #tpu.memory_space<vmem>>, vector<60x30xf32>
    %cst_11 = arith.constant dense<0.000000e+00> : vector<60x8xf32>
    %41 = tpu.matmul %40, %39, %cst_11 {dimension_numbers = #tpu.dot_dimension_numbers<[1], [0], [0], [1], [0, 0, 1, 1], [], []>} : vector<60x30xf32>, vector<30x8xf32>, vector<60x8xf32> -> vector<60x8xf32>
    %c0_12 = arith.constant 0 : index
    %c0_13 = arith.constant 0 : index
    %42 = vector.load %arg6[%c0_12, %c0_13] : memref<60x1xf32, #tpu.memory_space<vmem>>, vector<60x1xf32>
    %43 = vector.broadcast %42 : vector<60x1xf32> to vector<60x8xf32>
    %44 = arith.addf %41, %43 : vector<60x8xf32>
    %45 = tpu.iota {dimensions = array<i32: 0>} : vector<60x8xi32>
    %46 = tpu.iota {dimensions = array<i32: 1>} : vector<60x8xi32>
    %47 = vector.broadcast %1 : i32 to vector<60x8xi32>
    %48 = arith.addi %46, %47 : vector<60x8xi32>
    %c-1640531527_i32_14 = arith.constant -1640531527 : i32
    %49 = vector.broadcast %c-1640531527_i32_14 : i32 to vector<60x8xi32>
    %50 = arith.muli %48, %49 : vector<60x8xi32>
    %c-1028477387_i32_15 = arith.constant -1028477387 : i32
    %51 = vector.broadcast %c-1028477387_i32_15 : i32 to vector<60x8xi32>
    %52 = arith.muli %45, %51 : vector<60x8xi32>
    %53 = arith.xori %50, %52 : vector<60x8xi32>
    %54 = vector.broadcast %0 : i32 to vector<60x8xi32>
    %55 = arith.xori %53, %54 : vector<60x8xi32>
    %c-2052912941_i32 = arith.constant -2052912941 : i32
    %56 = vector.broadcast %c-2052912941_i32 : i32 to vector<60x8xi32>
    %57 = arith.xori %55, %56 : vector<60x8xi32>
    %c16_i32_16 = arith.constant 16 : i32
    %58 = vector.broadcast %c16_i32_16 : i32 to vector<60x8xi32>
    %59 = arith.shrui %57, %58 : vector<60x8xi32>
    %60 = arith.xori %57, %59 : vector<60x8xi32>
    %c2146121005_i32_17 = arith.constant 2146121005 : i32
    %61 = vector.broadcast %c2146121005_i32_17 : i32 to vector<60x8xi32>
    %62 = arith.muli %60, %61 : vector<60x8xi32>
    %c15_i32_18 = arith.constant 15 : i32
    %63 = vector.broadcast %c15_i32_18 : i32 to vector<60x8xi32>
    %64 = arith.shrui %62, %63 : vector<60x8xi32>
    %65 = arith.xori %62, %64 : vector<60x8xi32>
    %c-2073254261_i32_19 = arith.constant -2073254261 : i32
    %66 = vector.broadcast %c-2073254261_i32_19 : i32 to vector<60x8xi32>
    %67 = arith.muli %65, %66 : vector<60x8xi32>
    %c16_i32_20 = arith.constant 16 : i32
    %68 = vector.broadcast %c16_i32_20 : i32 to vector<60x8xi32>
    %69 = arith.shrui %67, %68 : vector<60x8xi32>
    %70 = arith.xori %67, %69 : vector<60x8xi32>
    %c858993459_i32_21 = arith.constant 858993459 : i32
    %71 = vector.broadcast %c858993459_i32_21 : i32 to vector<60x8xi32>
    %72 = arith.cmpi uge, %70, %71 : vector<60x8xi32>
    %cst_22 = arith.constant 1.250000e+00 : f32
    %73 = vector.broadcast %cst_22 : f32 to vector<60x8xf32>
    %74 = arith.mulf %44, %73 : vector<60x8xf32>
    %cst_23 = arith.constant 0.000000e+00 : f32
    %75 = vector.broadcast %cst_23 : f32 to vector<60x8xf32>
    %76 = arith.select %72, %74, %75 : vector<60x8xi1>, vector<60x8xf32>
    %c0_24 = arith.constant 0 : index
    %c0_25 = arith.constant 0 : index
    %77 = vector.load %arg7[%c0_24, %c0_25] : memref<1x60xf32, #tpu.memory_space<vmem>>, vector<1x60xf32>
    %cst_26 = arith.constant dense<0.000000e+00> : vector<1x8xf32>
    %78 = tpu.matmul %77, %76, %cst_26 {dimension_numbers = #tpu.dot_dimension_numbers<[1], [0], [0], [1], [0, 0, 1, 1], [], []>} : vector<1x60xf32>, vector<60x8xf32>, vector<1x8xf32> -> vector<1x8xf32>
    %c0_27 = arith.constant 0 : index
    %c0_28 = arith.constant 0 : index
    %79 = vector.load %arg8[%c0_27, %c0_28] : memref<1x1xf32, #tpu.memory_space<vmem>>, vector<1x1xf32>
    %80 = vector.broadcast %79 : vector<1x1xf32> to vector<1x8xf32>
    %81 = arith.addf %78, %80 : vector<1x8xf32>
    %c0_29 = arith.constant 0 : index
    %c0_30 = arith.constant 0 : index
    %82 = vector.load %arg9[%c0_29, %c0_30] : memref<1x8xf32, #tpu.memory_space<vmem>>, vector<1x8xf32>
    tpu.vector_store %arg9[%c0_29, %c0_30], %81 {strides = array<i32>} : memref<1x8xf32, #tpu.memory_space<vmem>>, vector<1x8xf32>,
    return
  }
  func.func @transform_0(%arg0: i32, %arg1: memref<1xi32, #tpu.memory_space<smem>>) -> (i32, i32) {
    %c0_i32 = arith.constant 0 : i32
    %c0_i32_0 = arith.constant 0 : i32
    return %c0_i32, %arg0 : i32, i32
  }
  func.func @transform_1(%arg0: i32, %arg1: memref<1xi32, #tpu.memory_space<smem>>) -> (i32, i32) {
    %c0_i32 = arith.constant 0 : i32
    %c0_i32_0 = arith.constant 0 : i32
    %c0_i32_1 = arith.constant 0 : i32
    return %c0_i32, %c0_i32_0 : i32, i32
  }
  func.func @transform_2(%arg0: i32, %arg1: memref<1xi32, #tpu.memory_space<smem>>) -> (i32, i32) {
    %c0_i32 = arith.constant 0 : i32
    %c0_i32_0 = arith.constant 0 : i32
    %c0_i32_1 = arith.constant 0 : i32
    return %c0_i32, %c0_i32_0 : i32, i32
  }
  func.func @transform_3(%arg0: i32, %arg1: memref<1xi32, #tpu.memory_space<smem>>) -> (i32, i32) {
    %c0_i32 = arith.constant 0 : i32
    %c0_i32_0 = arith.constant 0 : i32
    %c0_i32_1 = arith.constant 0 : i32
    return %c0_i32, %c0_i32_0 : i32, i32
  }
  func.func @transform_4(%arg0: i32, %arg1: memref<1xi32, #tpu.memory_space<smem>>) -> (i32, i32) {
    %c0_i32 = arith.constant 0 : i32
    %c0_i32_0 = arith.constant 0 : i32
    %c0_i32_1 = arith.constant 0 : i32
    return %c0_i32, %c0_i32_0 : i32, i32
  }
  func.func @transform_5(%arg0: i32, %arg1: memref<1xi32, #tpu.memory_space<smem>>) -> (i32, i32) {
    %c0_i32 = arith.constant 0 : i32
    %c0_i32_0 = arith.constant 0 : i32
    %c0_i32_1 = arith.constant 0 : i32
    return %c0_i32, %c0_i32_0 : i32, i32
  }
  func.func @transform_6(%arg0: i32, %arg1: memref<1xi32, #tpu.memory_space<smem>>) -> (i32, i32) {
    %c0_i32 = arith.constant 0 : i32
    %c0_i32_0 = arith.constant 0 : i32
    %c0_i32_1 = arith.constant 0 : i32
    return %c0_i32, %c0_i32_0 : i32, i32
  }
  func.func @transform_7(%arg0: i32, %arg1: memref<1xi32, #tpu.memory_space<smem>>) -> (i32, i32) {
    %c0_i32 = arith.constant 0 : i32
    %c0_i32_0 = arith.constant 0 : i32
    return %c0_i32, %arg0 : i32, i32
  }
}

</mosaic_0001>

<bundles_post_ra>
// kernel: tpu_custom_call.1
= control target key start
LH: loop header
LB: loop body
LE: loop exit
PB: predicated region body
PF: predicated region fallthrough
CT: control target
= control target key end

     0   :  { %s1033_s0 = inlined_call_operand.<no memory space> [shape: s32[1], index: 0, kind: input, shape index: {}]   ;;  %s1034_s1 = inlined_call_operand.vmem [shape: f32[10,8], index: 1, kind: input, shape index: {}]   ;;  %s1035_s2 = inlined_call_operand.vmem [shape: f32[30,10], index: 2, kind: input, shape index: {}]   ;;  %s1036_s3 = inlined_call_operand.vmem [shape: f32[30,1], index: 3, kind: input, shape index: {}]   ;;  %s1037_s4 = inlined_call_operand.vmem [shape: f32[60,30], index: 4, kind: input, shape index: {}]   ;;  %s1038_s5 = inlined_call_operand.vmem [shape: f32[60,1], index: 5, kind: input, shape index: {}]   ;;  %s1039_s6 = inlined_call_operand.vmem [shape: f32[1,60], index: 6, kind: input, shape index: {}]   ;;  %s1040_s7 = inlined_call_operand.<no memory space> [shape: f32[1,1], index: 7, kind: input, shape index: {}]   ;;  %s1041_s8 = inlined_call_operand.hbm [shape: f32[1,8], index: 8, kind: output, shape index: {}]  }
   0x1   :  { %v14_v0 = vstv %s1040_s7 }
   0x2   :  { %15 = vst [vmem:[#allocation4] sm:$0x1] %v14_v0 }
   0x3   :  { %v33_v1 = vld [vmem:[%s1034_s1] sm:$0xff]  ;;  %v34_v2 = vld [vmem:[%s1034_s1 + $0x8] sm:$0x3]  ;;  %vm76_vm0 = vcmask 1041408   ;;  %vm811_vm1 = vmmov 1   ;;  %vm63_vm3 = vcmask 80896  }
   0x4   :  { %v35_v3 = vld [vmem:[%s1035_s2] sm:$0xff]  ;;  %v745_v4 = vpack.c.bf16 %v34_v2, %v33_v1  ;;  %vm746_vm2 = vmpackc.low %vm76_vm0, %vm811_vm1  ;;  %v812_v5 = vmov 0   ;;  %v42_v7 = vld [vmem:[%s1036_s3 + $0x18] sm:$0x3f] }
   0x5   :  { %700 = vmatprep.mubr.msk.f32.mxu0 %vm63_vm3, %v35_v3  ;;  %785 = vset.pattern.permute.xlu0 %v812_v5  ;;  %v39_v6 = vld [vmem:[%s1036_s3] sm:$0xff]  ;;  %v36_v8 = vld [vmem:[%s1035_s2 + $0x8] sm:$0xff]  ;;  %v37_v10 = vld [vmem:[%s1035_s2 + $0x10] sm:$0xff] }
   0x6   :  { %747 = vmatprep.subr.msk.bf16.mxu0 %vm746_vm2, %v745_v4  ;;  %45 = vperm.xlu0 %785, %v39_v6   ;;  %v40_v9 = vld [vmem:[%s1036_s3 + $0x8] sm:$0xff]  ;;  %v41_v11 = vld [vmem:[%s1036_s3 + $0x10] sm:$0xff] }
   0x7   :  { %750 = vmatpush3.bf16.msk.msra.mxu0 %vm746_vm2, %v745_v4  ;;  %786 = vset.pattern.permute.xlu1 %v812_v5 }
   0x8   :  { %60 = vperm.xlu1 %786, %v42_v7  }
   0x9   :  { %16 = vsyncpa [#allocation6], 0  ;;  %v38_v12 = vld [vmem:[%s1035_s2 + $0x18] sm:$0x3f]  ;;  %v244_v13 = vld [vmem:[%s1038_s5] sm:$0xff]  ;;  %vm292_vm4 = vcmask 244736   ;;  %v165_v23 = vlaneseq  ;;  %v940_v36 = vstv %s1033_s0 }
   0xa   :  { %701 = vmatmul.mubr.msk.f32.vlgmr.msra.gmra.mrb[0].mxu0 %vm63_vm3, %v36_v8  ;;  %50 = vperm.xlu0 %785, %v40_v9   ;;  %v245_v14 = vld [vmem:[%s1038_s5 + $0x8] sm:$0xff]  ;;  %v246_v15 = vld [vmem:[%s1038_s5 + $0x10] sm:$0xff]  ;;  %v247_v16 = vld [vmem:[%s1038_s5 + $0x18] sm:$0xff]  ;;  %vm317_vm10 = vcmask 1045504   ;;  %vm814_vm15 = vmmov 0   ;;  %s816_s9 = smov [#allocation5]  }
   0xb   :  { %703 = vmatprep.mubr.msk.f32.mxu0 %vm63_vm3, %v37_v10  ;;  %v248_v17 = vld [vmem:[%s1038_s5 + $0x20] sm:$0xff]  ;;  %v249_v18 = vld [vmem:[%s1038_s5 + $0x28] sm:$0xff]  ;;  %v251_v19 = vld [vmem:[%s1038_s5 + $0x38] sm:$0xf]  ;;  %v927_v24 = vshrl.u32 %v165_v23, 7  ;;  %v171_v25 = vand.u32 127, %v165_v23 }
   0xc   :  { %55 = vperm.xlu1 %786, %v41_v11   ;;  %v250_v20 = vld [vmem:[%s1038_s5 + $0x30] sm:$0xff]  ;;  %v539_v21 = vld [vmem:[#allocation4] sm:$0x1]  ;;  %s635_s2 = sshll.u32 %s816_s9, 4  ;;  %s636_s2 = int_to_ptr.vmem [resolvable:$true] %s635_s2 }
   0xd   :  { %v236_v22 = vld [vmem:[%s1037_s4] sm:$0xff]  ;;  %v167_v26 = vadd.s32 8, %v927_v24  ;;  %v169_v27 = vadd.s32 24, %v927_v24  ;;  %v931_v28 = vmul.u32 2654435769, %v171_v25  ;;  %v168_v31 = vadd.s32 16, %v927_v24  ;;  %p792_p1 = scmp.lt.s32.totalorder %s636_s2, %s636_s2 }
   0xe   :  { %704 = vmatmul.mubr.msk.f32.gmra.mrb[2].mxu0 %vm63_vm3, %v38_v12  ;;  %254 = vperm.xlu0 %785, %v244_v13   ;;  %v175_v29 = vmul.u32 3266489909, %v927_v24  ;;  %s787_s10 = scalar_lea.vmem %s636_s2, 16  ;;  %s791_s11 = scalar_lea.vmem %s636_s2, 32 }
   0xf   :  { %714 = vmatprep.mubr.msk.f32.mxu1 %vm292_vm4, %v236_v22  ;;  %v176_v30 = vmul.u32 3266489909, %v167_v26  ;;  %v178_v32 = vmul.u32 3266489909, %v169_v27  ;;  %p788_p0 = scmp.ne.s32.totalorder %s636_s2, %s787_s10  ;;  %p793_p2 = scmp.lt.s32.totalorder %s791_s11, %s787_s10 }
  0x10   :  { %259 = vperm.xlu1 %786, %v245_v14   ;;  %v179_v33 = vxor.u32 %v175_v29, %v931_v28  ;;  %v177_v35 = vmul.u32 3266489909, %v168_v31 }
  0x11   :  { %v180_v34 = vxor.u32 %v176_v30, %v931_v28  ;;  %v182_v37 = vxor.u32 %v178_v32, %v931_v28  ;;  %p794_p3 = por %p793_p2, %p792_p1 }
  0x12   :  { %264 = vperm.xlu0 %785, %v246_v15   ;;  %v944_v38 = vxor.u32 %v940_v36, %v179_v33  ;;  %v181_v40 = vxor.u32 %v177_v35, %v931_v28 }
  0x13   :  { %v947_v39 = vxor.u32 %v940_v36, %v180_v34  ;;  %v951_v41 = vxor.u32 %v940_v36, %v182_v37  ;;  %v237_v37 = vld [vmem:[%s1037_s4 + $0x8] sm:$0xff]  ;;  %p795_p4 = pnand %p794_p3, %p788_p0 }
  0x14   :  { %269 = vperm.xlu1 %786, %v247_v16   ;;  %v188_v42 = vxor.u32 608135816, %v944_v38  ;;  %v956_v44 = vxor.u32 %v940_v36, %v181_v40  ;;  %v238_v40 = vld [vmem:[%s1037_s4 + $0x10] sm:$0xff] }
  0x15   :  { %v189_v43 = vxor.u32 608135816, %v947_v39  ;;  %v191_v45 = vxor.u32 608135816, %v951_v41 }
  0x16   :  { %274 = vperm.xlu0 %785, %v248_v17   ;;  %v192_v46 = vshrl.u32 %v188_v42, 16  ;;  %v190_v48 = vxor.u32 608135816, %v956_v44 }
  0x17   :  { %v193_v47 = vshrl.u32 %v189_v43, 16  ;;  %v195_v49 = vshrl.u32 %v191_v45, 16 }
  0x18   :  { %279 = vperm.xlu1 %786, %v249_v18   ;;  %v196_v50 = vxor.u32 %v192_v46, %v188_v42  ;;  %v194_v52 = vshrl.u32 %v190_v48, 16  ;;  %v239_v42 = vld [vmem:[%s1037_s4 + $0x18] sm:$0xff]  ;;  %v242_v46 = vld [vmem:[%s1037_s4 + $0x30] sm:$0xff] }
  0x19   :  { %v197_v51 = vxor.u32 %v193_v47, %v189_v43  ;;  %v199_v53 = vxor.u32 %v195_v49, %v191_v45  ;;  %v240_v43 = vld [vmem:[%s1037_s4 + $0x20] sm:$0xff]  ;;  %v241_v45 = vld [vmem:[%s1037_s4 + $0x28] sm:$0xff]  ;;  %v243_v47 = vld [vmem:[%s1037_s4 + $0x38] sm:$0xf]  ;;  %v443_v49 = vxor.u32 2242054355, %v947_v39 }
  0x1a   :  { %289 = vperm.xlu0 %785, %v251_v19   ;;  %v200_v54 = vmul.u32 2146121005, %v196_v50  ;;  %v198_v56 = vxor.u32 %v194_v52, %v190_v48  ;;  %v442_v48 = vxor.u32 2242054355, %v944_v38  ;;  %v813_v38 = vmov 0.0|0.0  }
  0x1b   :  { %v201_v55 = vmul.u32 2146121005, %v197_v51  ;;  %v203_v57 = vmul.u32 2146121005, %v199_v53  ;;  %v451_v51 = vshrl.u32 %v443_v49, 16  ;;  %763 = vmatprep.subr.bf16.mxu0 %v813_v38 }
  0x1c   :  { %284 = vperm.xlu1 %786, %v250_v20   ;;  %v204_v58 = vshrl.u32 %v200_v54, 15  ;;  %v202_v60 = vmul.u32 2146121005, %v198_v56  ;;  %v450_v50 = vshrl.u32 %v442_v48, 16 }
  0x1d   :  { %v205_v59 = vshrl.u32 %v201_v55, 15  ;;  %v207_v61 = vshrl.u32 %v203_v57, 15  ;;  %v459_v53 = vxor.u32 %v451_v51, %v443_v49 }
  0x1e   :  { %542 = vperm.xlu0 %785, %v539_v21   ;;  %v208_v62 = vxor.u32 %v204_v58, %v200_v54  ;;  %v206_v0 = vshrl.u32 %v202_v60, 15  ;;  %v458_v52 = vxor.u32 %v450_v50, %v442_v48 }
  0x1f   :  { %v209_v63 = vxor.u32 %v205_v59, %v201_v55  ;;  %v211_v1 = vxor.u32 %v207_v61, %v203_v57  ;;  %v467_v55 = vmul.u32 2146121005, %v459_v53 }
  0x20   :  { %v212_v2 = vmul.u32 2221713035, %v208_v62  ;;  %v210_v4 = vxor.u32 %v206_v0, %v202_v60  ;;  %v466_v54 = vmul.u32 2146121005, %v458_v52 }
  0x21   :  { %v213_v3 = vmul.u32 2221713035, %v209_v63  ;;  %v215_v5 = vmul.u32 2221713035, %v211_v1  ;;  %v475_v57 = vshrl.u32 %v467_v55, 15 }
  0x22   :  { %v216_v7 = vshrl.u32 %v212_v2, 16  ;;  %v214_v9 = vmul.u32 2221713035, %v210_v4  ;;  %v474_v56 = vshrl.u32 %v466_v54, 15  ;;  %v427_v4 = vadd.s32 40, %v927_v24 }
  0x23   :  { %v217_v8 = vshrl.u32 %v213_v3, 16  ;;  %v219_v10 = vshrl.u32 %v215_v5, 16  ;;  %v483_v59 = vxor.u32 %v475_v57, %v467_v55 }
  0x24   :  { %v220_v11 = vxor.u32 %v216_v7, %v212_v2  ;;  %v218_v13 = vshrl.u32 %v214_v9, 16  ;;  %v482_v58 = vxor.u32 %v474_v56, %v466_v54  ;;  %v815_v2 = vmov 0.0  }
  0x25   :  { %v221_v12 = vxor.u32 %v217_v8, %v213_v3  ;;  %v223_v19 = vxor.u32 %v219_v10, %v215_v5  ;;  %v491_v61 = vmul.u32 2221713035, %v483_v59  ;;  %742 = vmatprep.mubr.msk.f32.mxu0 %vm814_vm15, %v815_v2  ;;  %v426_v3 = vadd.s32 32, %v927_v24 }
  0x26   :  { %vm224_vm5 = vcmp.ge.u32.totalorder %v220_v11, 858993459  ;;  %v222_v21 = vxor.u32 %v218_v13, %v214_v9  ;;  %v490_v60 = vmul.u32 2221713035, %v482_v58  ;;  %v429_v5 = vadd.s32 56, %v927_v24 }
  0x27   :  { %vm225_vm6 = vcmp.ge.u32.totalorder %v221_v12, 858993459  ;;  %vm227_vm7 = vcmp.ge.u32.totalorder %v223_v19, 858993459  ;;  %v499_v63 = vshrl.u32 %v491_v61, 16  ;;  %v428_v8 = vadd.s32 48, %v927_v24 }
  0x28   :  { %vm752_vm8 = vmpackc.low %vm225_vm6, %vm224_vm5  ;;  %vm226_vm9 = vcmp.ge.u32.totalorder %v222_v21, 858993459  ;;  %v498_v62 = vshrl.u32 %v490_v60, 16  ;;  %v431_v7 = vmul.u32 3266489909, %v427_v4 }
  0x29   :  { %vm758_vm11 = vmpackc.low %vm317_vm10, %vm226_vm9  ;;  %v507_v1 = vxor.u32 %v499_v63, %v491_v61  ;;  %v433_v9 = vmul.u32 3266489909, %v429_v5  ;;  %v432_v12 = vmul.u32 3266489909, %v428_v8  ;;  %v444_v13 = vxor.u32 2242054355, %v956_v44 }
  0x2a   :  { %v506_v0 = vxor.u32 %v498_v62, %v490_v60  ;;  %v435_v11 = vxor.u32 %v431_v7, %v931_v28  ;;  %vm549_vm10 = vcmask 490496  }
  0x2b   :  { %vm515_vm13 = vcmp.ge.u32.totalorder %v507_v1, 858993459  ;;  %v452_v19 = vshrl.u32 %v444_v13, 16 }
  0x2c   :  { %vm514_vm12 = vcmp.ge.u32.totalorder %v506_v0, 858993459 }
  0x2d   :  { %vm991_vm14 = vmpackc.low %vm515_vm13, %vm514_vm12 }
  0x85   :  { %v46_v6 = vpop.permute.xlu0 %45 }
  0x87   :  { %v61_v14 = vpop.permute.xlu1 %60 }
  0x89   :  { %v51_v15 = vpop.permute.xlu0 %50 }
  0x8b   :  { %v56_v26 = vpop.permute.xlu1 %55 }
  0x8d   :  { %v255_v56 = vpop.permute.xlu0 %254 }
  0x8f   :  { %v260_v59 = vpop.permute.xlu1 %259 }
  0x91   :  { %v265_v2 = vpop.permute.xlu0 %264 }
  0x93   :  { %v270_v5 = vpop.permute.xlu1 %269 }
  0xdd   :  { %v702_v16 = vpop.f32.mrb[0].mxu0 }
  0xde   :  { %v152_v17 = vadd.f32 %v702_v16, %v51_v15  ;;  %v146_v18 = vpop.f32.mrb[1].mxu0  ;;  %v445_v15 = vxor.u32 2242054355, %v951_v41 }
  0xdf   :  { %v147_v20 = vadd.f32 %v146_v18, %v46_v6  ;;  %v430_v6 = vmul.u32 3266489909, %v426_v3  ;;  %v436_v18 = vxor.u32 %v432_v12, %v931_v28 }
  0xe0   :  { %v229_v22 = vmul.f32 1.25, %v152_v17  ;;  %v439_v17 = vxor.u32 %v435_v11, %v940_v36  ;;  %v453_v21 = vshrl.u32 %v445_v15, 16 }
  0xe1   :  { %v228_v23 = vmul.f32 1.25, %v147_v20  ;;  %v705_v25 = vpop.f32.mrb[2].mxu0  ;;  %v434_v10 = vxor.u32 %v430_v6, %v931_v28 }
  0xe2   :  { %v162_v27 = vadd.f32 %v705_v25, %v61_v14  ;;  %v156_v29 = vpop.f32.mrb[3].mxu0  ;;  %v437_v14 = vxor.u32 %v433_v9, %v931_v28  ;;  %v440_v25 = vxor.u32 %v436_v18, %v940_v36 }
  0xe3   :  { %v157_v30 = vadd.f32 %v156_v29, %v56_v26  ;;  %v751_v31 = vpack.c.bf16 %v229_v22, %v228_v23  ;;  %v438_v16 = vxor.u32 %v434_v10, %v940_v36  ;;  %v447_v23 = vxor.u32 2242054355, %v439_v17 }
  0xe4   :  { %v231_v32 = vmul.f32 1.25, %v162_v27  ;;  %v441_v20 = vxor.u32 %v437_v14, %v940_v36  ;;  %v460_v26 = vxor.u32 %v452_v19, %v444_v13  ;;  %v461_v27 = vxor.u32 %v453_v21, %v445_v15  ;;  %v275_v21 = vpop.permute.xlu0 %274 }
  0xe5   :  { %v230_v33 = vmul.f32 1.25, %v157_v30  ;;  %753 = vmatprep.subr.msk.bf16.mxu1 %vm752_vm8, %v751_v31  ;;  %v446_v22 = vxor.u32 2242054355, %v438_v16  ;;  %v455_v30 = vshrl.u32 %v447_v23, 16  ;;  %v448_v41 = vxor.u32 2242054355, %v440_v25 }
  0xe6   :  { %v235_v34 = vsel %vm227_vm7, %v231_v32, 0.0  ;;  %756 = vmatpush3.bf16.msk.msra.mxu1 %vm752_vm8, %v751_v31  ;;  %v449_v44 = vxor.u32 2242054355, %v441_v20  ;;  %v468_v31 = vmul.u32 2146121005, %v460_v26  ;;  %vm553_vm8 = vcmask 1043456  }
  0xe7   :  { %v757_v35 = vpack.c.bf16 %v235_v34, %v230_v33  ;;  %v454_v29 = vshrl.u32 %v446_v22, 16  ;;  %v469_v33 = vmul.u32 2146121005, %v461_v27  ;;  %v456_v28 = vshrl.u32 %v448_v41, 16 }
  0xe8   :  { %v457_v32 = vshrl.u32 %v449_v44, 16 }
  0xe9   :  { %759 = vmatprep.subr.msk.bf16.mxu1 %vm758_vm11, %v757_v35  ;;  %v462_v34 = vxor.u32 %v454_v29, %v446_v22 }
  0xea   :  { %762 = vmatpush3.bf16.msk.msra.mxu1 %vm758_vm11, %v757_v35  ;;  %v463_v35 = vxor.u32 %v455_v30, %v447_v23  ;;  %vm627_vm11 = vcmask 57344  }
  0xed   :  { %715 = vmatmul.mubr.msk.f32.vlgmr.msra.gmra.mrb[0].mxu1 %vm292_vm4, %v237_v37  ;;  %v476_v37 = vshrl.u32 %v468_v31, 15 }
  0xee   :  { %717 = vmatprep.mubr.msk.f32.mxu1 %vm292_vm4, %v238_v40  ;;  %v465_v40 = vxor.u32 %v457_v32, %v449_v44  ;;  %v280_v44 = vpop.permute.xlu1 %279 }
  0xf0   :  { %v473_v36 = vmul.u32 2146121005, %v465_v40 }
  0xf1   :  { %718 = vmatmul.mubr.msk.f32.gmra.mrb[2].mxu1 %vm292_vm4, %v239_v42  ;;  %v477_v42 = vshrl.u32 %v469_v33, 15 }
  0xf2   :  { %720 = vmatprep.mubr.msk.f32.mxu1 %vm292_vm4, %v240_v43  ;;  %v470_v43 = vmul.u32 2146121005, %v462_v34  ;;  %v481_v53 = vshrl.u32 %v473_v36, 15  ;;  %v285_v39 = vpop.permute.xlu1 %284 }
  0xf3   :  { %v485_v48 = vxor.u32 %v477_v42, %v469_v33 }
  0xf4   :  { %v478_v49 = vshrl.u32 %v470_v43, 15  ;;  %v489_v61 = vxor.u32 %v481_v53, %v473_v36 }
  0xf5   :  { %721 = vmatmul.mubr.msk.f32.gmra.mrb[4].mxu1 %vm292_vm4, %v241_v45  ;;  %v471_v45 = vmul.u32 2146121005, %v463_v35  ;;  %v493_v54 = vmul.u32 2221713035, %v485_v48 }
  0xf6   :  { %723 = vmatprep.mubr.msk.f32.mxu1 %vm292_vm4, %v242_v46  ;;  %v464_v46 = vxor.u32 %v456_v28, %v448_v41  ;;  %v486_v55 = vxor.u32 %v478_v49, %v470_v43  ;;  %v497_v8 = vmul.u32 2221713035, %v489_v61 }
  0xf7   :  { %v479_v50 = vshrl.u32 %v471_v45, 15  ;;  %v501_v62 = vshrl.u32 %v493_v54, 16 }
  0xf8   :  { %v472_v51 = vmul.u32 2146121005, %v464_v46  ;;  %v494_v63 = vmul.u32 2221713035, %v486_v55  ;;  %v505_v19 = vshrl.u32 %v497_v8, 16 }
  0xf9   :  { %724 = vmatmul.mubr.msk.f32.gmra.mrb[6].mxu1 %vm292_vm4, %v243_v47  ;;  %v484_v47 = vxor.u32 %v476_v37, %v468_v31  ;;  %v487_v57 = vxor.u32 %v479_v50, %v471_v45  ;;  %v509_v9 = vxor.u32 %v501_v62, %v493_v54  ;;  %v290_v37 = vpop.permute.xlu0 %289 }
  0xfa   :  { %v480_v58 = vshrl.u32 %v472_v51, 15  ;;  %v502_v10 = vshrl.u32 %v494_v63, 16  ;;  %v513_v32 = vxor.u32 %v505_v19, %v497_v8 }
  0xfb   :  { %v492_v52 = vmul.u32 2221713035, %v484_v47  ;;  %v495_v0 = vmul.u32 2221713035, %v487_v57  ;;  %vm517_vm1 = vcmp.ge.u32.totalorder %v509_v9, 858993459 }
  0xfc   :  { %v488_v1 = vxor.u32 %v480_v58, %v472_v51  ;;  %v510_v20 = vxor.u32 %v502_v10, %v494_v63  ;;  %vm521_vm5 = vcmp.ge.u32.totalorder %v513_v32, 858993459  ;;  %v538_v51 = vld [vmem:[%s1039_s6] sm:$0x1] }
  0xfd   :  { %v500_v60 = vshrl.u32 %v492_v52, 16  ;;  %v503_v12 = vshrl.u32 %v495_v0, 16  ;;  %v543_v53 = vpop.permute.xlu0 %542 }
  0xfe   :  { %v496_v13 = vmul.u32 2221713035, %v488_v1  ;;  %vm518_vm3 = vcmp.ge.u32.totalorder %v510_v20, 858993459 }
  0xff   :  { %v508_v4 = vxor.u32 %v500_v60, %v492_v52  ;;  %v511_v25 = vxor.u32 %v503_v12, %v495_v0  ;;  %v547_v52 = vsub.s32 0, %v927_v24 }
 0x100   :  { %v504_v26 = vshrl.u32 %v496_v13, 16 }
 0x101   :  { %vm516_vm0 = vcmp.ge.u32.totalorder %v508_v4, 858993459  ;;  %vm519_vm4 = vcmp.ge.u32.totalorder %v511_v25, 858993459  ;;  %v548_v54 = vrot.slane %v543_v53, %v547_v52 }
 0x102   :  { %vm769_vm2 = vmpackc.low %vm517_vm1, %vm516_vm0  ;;  %v512_v35 = vxor.u32 %v504_v26, %v496_v13 }
 0x103   :  { %vm773_vm6 = vmpackc.low %vm519_vm4, %vm518_vm3 }
 0x104   :  { %vm520_vm7 = vcmp.ge.u32.totalorder %v512_v35, 858993459 }
 0x105   :  { %vm777_vm9 = vmpackc.low %vm553_vm8, %vm520_vm7 }
 0x1c0   :  { %v716_v3 = vpop.f32.mrb[0].mxu1 }
 0x1c1   :  { %v393_v6 = vadd.f32 %v716_v3, %v260_v59  ;;  %v387_v7 = vpop.f32.mrb[1].mxu1 }
 0x1c2   :  { %v388_v11 = vadd.f32 %v387_v7, %v255_v56 }
 0x1c3   :  { %v523_v14 = vmul.f32 1.25, %v393_v6 }
 0x1c4   :  { %v522_v15 = vmul.f32 1.25, %v388_v11  ;;  %v719_v16 = vpop.f32.mrb[2].mxu1 }
 0x1c5   :  { %v403_v17 = vadd.f32 %v719_v16, %v270_v5  ;;  %v397_v18 = vpop.f32.mrb[3].mxu1 }
 0x1c6   :  { %v764_v22 = vpack.c.bf16 %v523_v14, %v522_v15  ;;  %v398_v23 = vadd.f32 %v397_v18, %v265_v2 }
 0x1c7   :  { %v525_v27 = vmul.f32 1.25, %v403_v17 }
 0x1c8   :  { %v524_v29 = vmul.f32 1.25, %v398_v23  ;;  %v722_v30 = vpop.f32.mrb[4].mxu1  ;;  %766 = vmatpush3.bf16.msk.msra.mxu0 %vm991_vm14, %v764_v22 }
 0x1c9   :  { %v413_v41 = vadd.f32 %v722_v30, %v280_v44  ;;  %v407_v31 = vpop.f32.mrb[5].mxu1  ;;  %767 = vmatprep.subr.bf16.mxu0 %v813_v38 }
 0x1ca   :  { %v768_v33 = vpack.c.bf16 %v525_v27, %v524_v29  ;;  %v408_v34 = vadd.f32 %v407_v31, %v275_v21 }
 0x1cb   :  { %v527_v28 = vmul.f32 1.25, %v413_v41 }
 0x1cc   :  { %v526_v40 = vmul.f32 1.25, %v408_v34  ;;  %v725_v42 = vpop.f32.mrb[6].mxu1  ;;  %770 = vmatpush3.bf16.msk.msra.mxu0 %vm769_vm2, %v768_v33 }
 0x1cd   :  { %v423_v43 = vadd.f32 %v725_v42, %v290_v37  ;;  %v417_v45 = vpop.f32.mrb[7].mxu1  ;;  %771 = vmatprep.subr.bf16.mxu0 %v813_v38 }
 0x1ce   :  { %v772_v46 = vpack.c.bf16 %v527_v28, %v526_v40  ;;  %v418_v47 = vadd.f32 %v417_v45, %v285_v39 }
 0x1cf   :  { %v529_v36 = vmul.f32 1.25, %v423_v43 }
 0x1d0   :  { %v528_v48 = vmul.f32 1.25, %v418_v47  ;;  %774 = vmatpush3.bf16.msk.msra.mxu0 %vm773_vm6, %v772_v46 }
 0x1d1   :  { %v537_v49 = vsel %vm521_vm5, %v529_v36, 0.0  ;;  %775 = vmatprep.subr.bf16.mxu0 %v813_v38 }
 0x1d2   :  { %v776_v50 = vpack.c.bf16 %v537_v49, %v528_v48 }
 0x1d4   :  { %778 = vmatpush3.bf16.msk.msra.mxu0 %vm777_vm9, %v776_v50 }
 0x1d7   :  { %743 = vmatmul.mubr.msk.f32.vlgmr.msra.gmra.mrb[4].mxu0 %vm549_vm10, %v538_v51 }
 0x2aa   :  { %v623_v55 = vpop.f32.mrb[4].mxu0 }
 0x2ab   :  { %v624_v56 = vadd.f32 %v623_v55, %v548_v54  ;;  %v744_v57 = vpop.f32.mrb[5].mxu0 }
 0x2ad   :  { %628 = vst.msk [vmem:[#allocation5] sm:$0x1] %vm627_vm11, %v624_v56 }
 0x2ae   :  { %798 = shalt.err (!%p795_p4)
}
 0x2af   :  { %s799_s7 = scalar_lea.hbm %s1041_s8, 16 }
 0x2b0   :  { %p800_p5 = scmp.ne.s32.totalorder %s1041_s8, %s799_s7  ;;  %p803_p6 = scmp.lt.u32.totalorder %s799_s7, %s1041_s8 }
 0x2b2   :  { %p805_p7 = pnand %p803_p6, %p800_p5 }
 0x2b4   :  { %808 = shalt.err (!%p805_p7)
}
 0x2b5   :  { %638 = dma.vmem_to_hbm [thread:$0]  %s636_s2, 16, %s1041_s8, [#allocation6]  }
 0x2b6   :  { %809 = dma.done.wait [#allocation6], 16  }
 0x2b7   :  { %810 = vsyncadd [#allocation6], 4294967280 }
 0x2b8   :  { %642 = vsyncpa [#allocation6], 1 }

</bundles_post_ra>
